<compile_context>
chip_gen: v7x
topology: tpu7x:2x2x1
jax: 0.10.0
libtpu: 0.0.40
codegen_flags: <defaults>
</compile_context>

<pallas_src>
import functools

import jax
import jax.numpy as jnp
from jax.experimental import pallas as pl
from jax.experimental.pallas import tpu as pltpu


FC2_PAD = 128  # lane-dense output slab; true fc2 columns are sliced outside.


# --------------------------- fused forward kernel ---------------------------
def fused_kernel(
    ids_ref,      # [1, 2*Bblk, T] int32 (rows: Bblk premise rows, then Bblk hypothesis rows)
    eprojp_ref,   # [T*V, H] bf16, rows t*V..(t+1)*V-1 = embed @ Wx @ Wh^(T-1-t)
    bh_ref,       # [1, H]   f32  = b_ih @ sum_{k<T} Wh^k
    w1_ref,       # [4H, FC1] bf16 (BN1-folded)
    b1_ref,       # [1, FC1] f32
    w2_ref,       # [FC1, FC2_PAD] bf16 (BN2-folded, lane-padded)
    b2_ref,       # [1, FC2_PAD] f32
    out_ref,      # [Bblk, FC2_PAD] f32
):
    _, B2, T = ids_ref.shape
    TV, H = eprojp_ref.shape
    V = TV // T
    Bblk = B2 // 2

    ids = ids_ref[0]                                                 # [B2, T] int32

    # Wide one-hot over (time, vocab): onehot[b, t*V + v] = (ids[b, t] == v).
    # Built with T static VPU compares against a lane iota — no gathers, no 3-D
    # reshapes; T*V is a multiple of 128 so the tile is lane-dense.
    t_iota = jax.lax.broadcasted_iota(jnp.int32, (B2, T), 1)
    target = t_iota * V + ids                                        # [B2, T]
    col = jax.lax.broadcasted_iota(jnp.int32, (B2, TV), 1)           # [B2, T*V]
    onehot = jnp.zeros((B2, TV), jnp.float32)
    for t in range(T):                                               # static unroll (T=8)
        onehot = onehot + (col == target[:, t:t + 1]).astype(jnp.float32)

    # Embedding lookup + input projection + full linear recurrence == ONE matmul.
    h = jnp.dot(onehot.astype(jnp.bfloat16), eprojp_ref[...],
                preferred_element_type=jnp.float32) + bh_ref[...]    # [B2, H] f32
    p = h[:Bblk, :]        # premise final hidden
    q = h[Bblk:, :]        # hypothesis final hidden

    # Merger (+ BN1 folded into W1) as a single lane-dense K=4H matmul.
    m = jnp.concatenate([p, q, p - q, p * q], axis=1)                # [Bblk, 4H=128]
    y = jnp.dot(m.astype(jnp.bfloat16), w1_ref[...],
                preferred_element_type=jnp.float32) + b1_ref[...]
    y = jnp.maximum(y, 0.0)                    # ReLU (Dropout = identity in eval)

    # BN2 + Linear2 folded into W2'/b2' (lane-padded to 128 columns).
    out_ref[...] = jnp.dot(y.astype(jnp.bfloat16), w2_ref[...],
                           preferred_element_type=jnp.float32) + b2_ref[...]


# ------------------------------- wrapper -------------------------------------
@functools.partial(jax.jit, static_argnames=("fc2_dim",))
def rnn_classifier_forward(premise_ids, hypothesis_ids, prepared, *, fc2_dim):
    B, T = premise_ids.shape
    TV, H = prepared["eprojp"].shape
    FC1 = prepared["w1"].shape[1]

    # Batch block: single block at tiny B; multiple blocks (sharded across v7x's
    # two TensorCores via the "parallel" grid axis) at larger batches.
    Bblk = B if B <= 256 else 256
    assert B % Bblk == 0 and (Bblk == B or Bblk % 8 == 0)
    nblk = B // Bblk

    # Host-side prep: pack each batch block's premise + hypothesis rows adjacently
    # so every grid block reads one contiguous [2*Bblk, T] id tile.
    ids = jnp.concatenate(
        [premise_ids.reshape(nblk, Bblk, T).astype(jnp.int32),
         hypothesis_ids.reshape(nblk, Bblk, T).astype(jnp.int32)],
        axis=1,
    )                                                                 # [nblk, 2*Bblk, T]

    args = (ids, prepared["eprojp"], prepared["bh"], prepared["w1"],
            prepared["b1"], prepared["w2"], prepared["b2"])

    def _resident(a):  # whole-array block, same for every grid step (weights/biases)
        return pl.BlockSpec(a.shape, lambda i, _nd=a.ndim: (0,) * _nd)

    in_specs = [pl.BlockSpec((1, 2 * Bblk, T), lambda i: (i, 0, 0))]
    in_specs += [_resident(a) for a in args[1:]]
    out_specs = pl.BlockSpec((Bblk, FC2_PAD), lambda i: (i, 0))

    # Real scheduler hints (previously hard-coded).
    flops = 2 * (2 * B * TV * H + B * 4 * H * FC1 + B * FC1 * FC2_PAD)
    arg_bytes = sum(int(a.size) * a.dtype.itemsize for a in args)
    out_bytes = B * FC2_PAD * 4
    onehot_bytes = 2 * Bblk * TV * 6            # f32 build + bf16 copy per block
    vmem_limit = int(min(64 * 2**20,
                         max(8 * 2**20, 4 * (arg_bytes + out_bytes + onehot_bytes))))

    out_pad = pl.pallas_call(
        fused_kernel,
        out_shape=jax.ShapeDtypeStruct((B, FC2_PAD), jnp.float32),
        grid=(nblk,),
        in_specs=in_specs,
        out_specs=out_specs,
        compiler_params=pltpu.CompilerParams(
            dimension_semantics=("parallel",),
            vmem_limit_bytes=vmem_limit,
        ),
        cost_estimate=pl.CostEstimate(
            flops=flops, transcendentals=0, bytes_accessed=arg_bytes + out_bytes),
    )(*args)
    return out_pad[:, :fc2_dim]


# --------------------------- parameter handling ------------------------------
def init_params(key, vocab_dim, embed_dim, hidden_size, fc1_dim, fc2_dim):
    """Raw params, mirroring the PyTorch module layout."""
    assert hidden_size == embed_dim, "Merger dims require hidden_size == embed_dim"
    ks = jax.random.split(key, 12)
    f32 = jnp.float32
    E, H = embed_dim, hidden_size

    def lin(k, fan_in, fan_out):
        bound = 1.0 / jnp.sqrt(fan_in)
        kw, kb = jax.random.split(k)
        w = jax.random.uniform(kw, (fan_in, fan_out), f32, -bound, bound)
        b = jax.random.uniform(kb, (1, fan_out), f32, -bound, bound)
        return w, b

    embed = jax.random.normal(ks[0], (vocab_dim, E), f32)

    # RNNCell.input2hidden: Linear(E + H, H) split into Wx [E,H] and Wh [H,H].
    w_ih, b_ih = lin(ks[1], E + H, H)
    wx, wh = w_ih[:E, :], w_ih[E:, :]
    # RNNCell.input2output + LogSoftmax are discarded by Encoder -> omitted.

    w1, b1 = lin(ks[2], 4 * E, fc1_dim)
    w2, b2 = lin(ks[3], fc1_dim, fc2_dim)

    bn1_g = 1.0 + 0.1 * jax.random.normal(ks[4], (1, 4 * E), f32)
    bn1_b = 0.1 * jax.random.normal(ks[5], (1, 4 * E), f32)
    bn1_m = 0.1 * jax.random.normal(ks[6], (1, 4 * E), f32)
    bn1_v = 1.0 + 0.1 * jax.random.uniform(ks[7], (1, 4 * E), f32)
    bn2_g = 1.0 + 0.1 * jax.random.normal(ks[8], (1, fc1_dim), f32)
    bn2_b = 0.1 * jax.random.normal(ks[9], (1, fc1_dim), f32)
    bn2_m = 0.1 * jax.random.normal(ks[10], (1, fc1_dim), f32)
    bn2_v = 1.0 + 0.1 * jax.random.uniform(ks[11], (1, fc1_dim), f32)

    return dict(
        embed=embed, wx=wx, wh=wh, bh=b_ih,
        w1=w1, b1=b1, w2=w2, b2=b2,
        bn1_g=bn1_g, bn1_b=bn1_b, bn1_m=bn1_m, bn1_v=bn1_v,
        bn2_g=bn2_g, bn2_b=bn2_b, bn2_m=bn2_m, bn2_v=bn2_v,
    )


def prepare_params(raw, seq_len, eps=1e-5):
    """Fold embedding, Wh powers (linearized recurrence) and eval BatchNorms."""
    H = raw["wh"].shape[0]
    T = seq_len

    # h_T = sum_t onehot_t @ (embed @ Wx @ Wh^(T-1-t)) + b_ih @ sum_{k<T} Wh^k
    eproj = raw["embed"] @ raw["wx"]                                  # [V, H]
    per_t = [None] * T
    wh_pow = jnp.eye(H, dtype=jnp.float32)                            # Wh^0
    pow_sum = jnp.zeros((H, H), jnp.float32)
    for k in range(T):                                                # k = power
        per_t[T - 1 - k] = eproj @ wh_pow                             # time t = T-1-k
        pow_sum = pow_sum + wh_pow
        wh_pow = wh_pow @ raw["wh"]
    eprojp = jnp.concatenate(per_t, axis=0)                           # [T*V, H]
    bh_fold = raw["bh"] @ pow_sum                                     # [1, H]

    scale1 = raw["bn1_g"] * jax.lax.rsqrt(raw["bn1_v"] + eps)         # [1, 4H]
    shift1 = raw["bn1_b"] - raw["bn1_m"] * scale1
    w1f = scale1.reshape(-1, 1) * raw["w1"]                           # [4H, FC1]
    b1f = raw["b1"] + shift1 @ raw["w1"]                              # [1, FC1]

    scale2 = raw["bn2_g"] * jax.lax.rsqrt(raw["bn2_v"] + eps)         # [1, FC1]
    shift2 = raw["bn2_b"] - raw["bn2_m"] * scale2
    w2f = scale2.reshape(-1, 1) * raw["w2"]                           # [FC1, FC2]
    b2f = raw["b2"] + shift2 @ raw["w2"]                              # [1, FC2]

    fc2 = raw["w2"].shape[1]
    pad = FC2_PAD - fc2
    w2p = jnp.pad(w2f, ((0, 0), (0, pad)))
    b2p = jnp.pad(b2f, ((0, 0), (0, pad)))

    return dict(
        eprojp=eprojp.astype(jnp.bfloat16),
        bh=bh_fold.astype(jnp.float32),
        w1=w1f.astype(jnp.bfloat16), b1=b1f.astype(jnp.float32),
        w2=w2p.astype(jnp.bfloat16), b2=b2p.astype(jnp.float32),
    )


# -------------------------- pure-JAX reference --------------------------------
def reference_forward(premise_ids, hypothesis_ids, raw, eps=1e-5):
    embed = raw["embed"]

    def encode(ids):
        x = embed[ids]                                  # [B, T, E]
        Bx, Tx, _ = x.shape
        h = jnp.zeros((Bx, raw["wh"].shape[0]), jnp.float32)
        for t in range(Tx):
            h = x[:, t, :] @ raw["wx"] + h @ raw["wh"] + raw["bh"]
        return h

    p = encode(premise_ids)
    q = encode(hypothesis_ids)
    x = jnp.concatenate([p, q, p - q, p * q], axis=1)
    x = (x - raw["bn1_m"]) * jax.lax.rsqrt(raw["bn1_v"] + eps) * raw["bn1_g"] + raw["bn1_b"]
    x = x @ raw["w1"] + raw["b1"]
    x = jnp.maximum(x, 0.0)
    x = (x - raw["bn2_m"]) * jax.lax.rsqrt(raw["bn2_v"] + eps) * raw["bn2_g"] + raw["bn2_b"]
    return x @ raw["w2"] + raw["b2"]


# ----------------------------------- main -------------------------------------
if __name__ == "__main__":
    # config: vocab_dim=64, embed_dim=hidden_size=32, fc1_dim=64, fc2_dim=4
    B, T = 8, 8
    VOCAB, EMBED, HIDDEN, FC1, FC2 = 64, 32, 32, 64, 4

    key = jax.random.PRNGKey(0)
    k_params, k_prem, k_hypo = jax.random.split(key, 3)
    raw = init_params(k_params, VOCAB, EMBED, HIDDEN, FC1, FC2)
    prepared = prepare_params(raw, seq_len=T)

    premise = jax.random.randint(k_prem, (B, T), 0, VOCAB, dtype=jnp.int32)
    hypothesis = jax.random.randint(k_hypo, (B, T), 0, VOCAB, dtype=jnp.int32)

    scores = rnn_classifier_forward(premise, hypothesis, prepared, fc2_dim=FC2)
    jax.block_until_ready(scores)

    assert scores.shape == (B, FC2) and scores.dtype == jnp.float32
    assert bool(jnp.all(jnp.isfinite(scores)))

    ref = reference_forward(premise, hypothesis, raw)
    # bf16 MXU operands + linearized recurrence -> loosened parity vs f32 reference.
    assert bool(jnp.allclose(scores, ref, rtol=5e-2, atol=5e-2)), (
        "mismatch vs pure-JAX reference"
    )
    print("KERNEL_OK")
</pallas_src>

<mosaic_0001>
module attributes {stable_mosaic.version = 11 : i64} {
  func.func @fused_kernel(%arg0: i32, %arg1: memref<1x16x8xi32, #tpu.memory_space<vmem>>, %arg2: memref<512x32xbf16, #tpu.memory_space<vmem>>, %arg3: memref<1x32xf32, #tpu.memory_space<vmem>>, %arg4: memref<128x64xbf16, #tpu.memory_space<vmem>>, %arg5: memref<1x64xf32, #tpu.memory_space<vmem>>, %arg6: memref<64x128xbf16, #tpu.memory_space<vmem>>, %arg7: memref<1x128xf32, #tpu.memory_space<vmem>>, %arg8: memref<8x128xf32, #tpu.memory_space<vmem>>) attributes {dimension_semantics = [#tpu.dimension_semantics<parallel>], iteration_bounds = array<i64: 1>, scalar_prefetch = 0 : i64, scratch_operands = 0 : i64, tpu.core_type = #tpu.core_type<tc>, window_params = [{transform_indices = @transform_0, window_bounds = array<i64: 1, 16, 8>}, {pipeline_mode = #tpu.pipeline_mode<synchronous>, transform_indices = @transform_1, window_bounds = array<i64: 512, 32>}, {pipeline_mode = #tpu.pipeline_mode<synchronous>, transform_indices = @transform_2, window_bounds = array<i64: 1, 32>}, {pipeline_mode = #tpu.pipeline_mode<synchronous>, transform_indices = @transform_3, window_bounds = array<i64: 128, 64>}, {pipeline_mode = #tpu.pipeline_mode<synchronous>, transform_indices = @transform_4, window_bounds = array<i64: 1, 64>}, {pipeline_mode = #tpu.pipeline_mode<synchronous>, transform_indices = @transform_5, window_bounds = array<i64: 64, 128>}, {pipeline_mode = #tpu.pipeline_mode<synchronous>, transform_indices = @transform_6, window_bounds = array<i64: 1, 128>}, {transform_indices = @transform_7, window_bounds = array<i64: 8, 128>}]} {
    %c0 = arith.constant 0 : index
    %c0_0 = arith.constant 0 : index
    %c0_1 = arith.constant 0 : index
    %0 = vector.load %arg1[%c0, %c0_0, %c0_1] : memref<1x16x8xi32, #tpu.memory_space<vmem>>, vector<1x16x8xi32>
    %1 = vector.shape_cast %0 : vector<1x16x8xi32> to vector<16x8xi32>
    %2 = tpu.iota {dimensions = array<i32: 1>} : vector<16x8xi32>
    %c64_i32 = arith.constant 64 : i32
    %3 = vector.broadcast %c64_i32 : i32 to vector<16x8xi32>
    %4 = arith.muli %2, %3 : vector<16x8xi32>
    %5 = arith.addi %4, %1 : vector<16x8xi32>
    %6 = tpu.iota {dimensions = array<i32: 1>} : vector<16x512xi32>
    %cst = arith.constant 0.000000e+00 : f32
    %7 = vector.broadcast %cst : f32 to vector<16x512xf32>
    %8 = vector.extract_strided_slice %5 {offsets = [0, 0], sizes = [16, 1], strides = [1, 1]} : vector<16x8xi32> to vector<16x1xi32>
    %9 = vector.broadcast %8 : vector<16x1xi32> to vector<16x512xi32>
    %10 = arith.cmpi eq, %6, %9 : vector<16x512xi32>
    %11 = arith.extui %10 : vector<16x512xi1> to vector<16x512xi32>
    %12 = arith.sitofp %11 : vector<16x512xi32> to vector<16x512xf32>
    %13 = arith.addf %7, %12 : vector<16x512xf32>
    %14 = vector.extract_strided_slice %5 {offsets = [0, 1], sizes = [16, 1], strides = [1, 1]} : vector<16x8xi32> to vector<16x1xi32>
    %15 = vector.broadcast %14 : vector<16x1xi32> to vector<16x512xi32>
    %16 = arith.cmpi eq, %6, %15 : vector<16x512xi32>
    %17 = arith.extui %16 : vector<16x512xi1> to vector<16x512xi32>
    %18 = arith.sitofp %17 : vector<16x512xi32> to vector<16x512xf32>
    %19 = arith.addf %13, %18 : vector<16x512xf32>
    %20 = vector.extract_strided_slice %5 {offsets = [0, 2], sizes = [16, 1], strides = [1, 1]} : vector<16x8xi32> to vector<16x1xi32>
    %21 = vector.broadcast %20 : vector<16x1xi32> to vector<16x512xi32>
    %22 = arith.cmpi eq, %6, %21 : vector<16x512xi32>
    %23 = arith.extui %22 : vector<16x512xi1> to vector<16x512xi32>
    %24 = arith.sitofp %23 : vector<16x512xi32> to vector<16x512xf32>
    %25 = arith.addf %19, %24 : vector<16x512xf32>
    %26 = vector.extract_strided_slice %5 {offsets = [0, 3], sizes = [16, 1], strides = [1, 1]} : vector<16x8xi32> to vector<16x1xi32>
    %27 = vector.broadcast %26 : vector<16x1xi32> to vector<16x512xi32>
    %28 = arith.cmpi eq, %6, %27 : vector<16x512xi32>
    %29 = arith.extui %28 : vector<16x512xi1> to vector<16x512xi32>
    %30 = arith.sitofp %29 : vector<16x512xi32> to vector<16x512xf32>
    %31 = arith.addf %25, %30 : vector<16x512xf32>
    %32 = vector.extract_strided_slice %5 {offsets = [0, 4], sizes = [16, 1], strides = [1, 1]} : vector<16x8xi32> to vector<16x1xi32>
    %33 = vector.broadcast %32 : vector<16x1xi32> to vector<16x512xi32>
    %34 = arith.cmpi eq, %6, %33 : vector<16x512xi32>
    %35 = arith.extui %34 : vector<16x512xi1> to vector<16x512xi32>
    %36 = arith.sitofp %35 : vector<16x512xi32> to vector<16x512xf32>
    %37 = arith.addf %31, %36 : vector<16x512xf32>
    %38 = vector.extract_strided_slice %5 {offsets = [0, 5], sizes = [16, 1], strides = [1, 1]} : vector<16x8xi32> to vector<16x1xi32>
    %39 = vector.broadcast %38 : vector<16x1xi32> to vector<16x512xi32>
    %40 = arith.cmpi eq, %6, %39 : vector<16x512xi32>
    %41 = arith.extui %40 : vector<16x512xi1> to vector<16x512xi32>
    %42 = arith.sitofp %41 : vector<16x512xi32> to vector<16x512xf32>
    %43 = arith.addf %37, %42 : vector<16x512xf32>
    %44 = vector.extract_strided_slice %5 {offsets = [0, 6], sizes = [16, 1], strides = [1, 1]} : vector<16x8xi32> to vector<16x1xi32>
    %45 = vector.broadcast %44 : vector<16x1xi32> to vector<16x512xi32>
    %46 = arith.cmpi eq, %6, %45 : vector<16x512xi32>
    %47 = arith.extui %46 : vector<16x512xi1> to vector<16x512xi32>
    %48 = arith.sitofp %47 : vector<16x512xi32> to vector<16x512xf32>
    %49 = arith.addf %43, %48 : vector<16x512xf32>
    %50 = vector.extract_strided_slice %5 {offsets = [0, 7], sizes = [16, 1], strides = [1, 1]} : vector<16x8xi32> to vector<16x1xi32>
    %51 = vector.broadcast %50 : vector<16x1xi32> to vector<16x512xi32>
    %52 = arith.cmpi eq, %6, %51 : vector<16x512xi32>
    %53 = arith.extui %52 : vector<16x512xi1> to vector<16x512xi32>
    %54 = arith.sitofp %53 : vector<16x512xi32> to vector<16x512xf32>
    %55 = arith.addf %49, %54 : vector<16x512xf32>
    %56 = arith.truncf %55 : vector<16x512xf32> to vector<16x512xbf16>
    %c0_2 = arith.constant 0 : index
    %c0_3 = arith.constant 0 : index
    %57 = vector.load %arg2[%c0_2, %c0_3] : memref<512x32xbf16, #tpu.memory_space<vmem>>, vector<512x32xbf16>
    %cst_4 = arith.constant dense<0.000000e+00> : vector<16x32xf32>
    %58 = tpu.matmul %56, %57, %cst_4 {dimension_numbers = #tpu.dot_dimension_numbers<[1], [0], [0], [1], [0, 0, 1, 1], [], []>} : vector<16x512xbf16>, vector<512x32xbf16>, vector<16x32xf32> -> vector<16x32xf32>
    %c0_5 = arith.constant 0 : index
    %c0_6 = arith.constant 0 : index
    %59 = vector.load %arg3[%c0_5, %c0_6] : memref<1x32xf32, #tpu.memory_space<vmem>>, vector<1x32xf32>
    %60 = vector.broadcast %59 : vector<1x32xf32> to vector<16x32xf32>
    %61 = arith.addf %58, %60 : vector<16x32xf32>
    %62 = vector.extract_strided_slice %61 {offsets = [0, 0], sizes = [8, 32], strides = [1, 1]} : vector<16x32xf32> to vector<8x32xf32>
    %63 = vector.extract_strided_slice %61 {offsets = [8, 0], sizes = [8, 32], strides = [1, 1]} : vector<16x32xf32> to vector<8x32xf32>
    %64 = arith.subf %62, %63 : vector<8x32xf32>
    %65 = arith.mulf %62, %63 : vector<8x32xf32>
    %66 = tpu.concatenate %62, %63, %64, %65 in 1 : vector<8x32xf32>, vector<8x32xf32>, vector<8x32xf32>, vector<8x32xf32> -> vector<8x128xf32>
    %67 = arith.truncf %66 : vector<8x128xf32> to vector<8x128xbf16>
    %c0_7 = arith.constant 0 : index
    %c0_8 = arith.constant 0 : index
    %68 = vector.load %arg4[%c0_7, %c0_8] : memref<128x64xbf16, #tpu.memory_space<vmem>>, vector<128x64xbf16>
    %cst_9 = arith.constant dense<0.000000e+00> : vector<8x64xf32>
    %69 = tpu.matmul %67, %68, %cst_9 {dimension_numbers = #tpu.dot_dimension_numbers<[1], [0], [0], [1], [0, 0, 1, 1], [], []>} : vector<8x128xbf16>, vector<128x64xbf16>, vector<8x64xf32> -> vector<8x64xf32>
    %c0_10 = arith.constant 0 : index
    %c0_11 = arith.constant 0 : index
    %70 = vector.load %arg5[%c0_10, %c0_11] : memref<1x64xf32, #tpu.memory_space<vmem>>, vector<1x64xf32>
    %71 = vector.broadcast %70 : vector<1x64xf32> to vector<8x64xf32>
    %72 = arith.addf %69, %71 : vector<8x64xf32>
    %cst_12 = arith.constant 0.000000e+00 : f32
    %73 = vector.broadcast %cst_12 : f32 to vector<8x64xf32>
    %74 = arith.maximumf %72, %73 : vector<8x64xf32>
    %75 = arith.truncf %74 : vector<8x64xf32> to vector<8x64xbf16>
    %c0_13 = arith.constant 0 : index
    %c0_14 = arith.constant 0 : index
    %76 = vector.load %arg6[%c0_13, %c0_14] : memref<64x128xbf16, #tpu.memory_space<vmem>>, vector<64x128xbf16>
    %cst_15 = arith.constant dense<0.000000e+00> : vector<8x128xf32>
    %77 = tpu.matmul %75, %76, %cst_15 {dimension_numbers = #tpu.dot_dimension_numbers<[1], [0], [0], [1], [0, 0, 1, 1], [], []>} : vector<8x64xbf16>, vector<64x128xbf16>, vector<8x128xf32> -> vector<8x128xf32>
    %c0_16 = arith.constant 0 : index
    %c0_17 = arith.constant 0 : index
    %78 = vector.load %arg7[%c0_16, %c0_17] : memref<1x128xf32, #tpu.memory_space<vmem>>, vector<1x128xf32>
    %79 = vector.broadcast %78 : vector<1x128xf32> to vector<8x128xf32>
    %80 = arith.addf %77, %79 : vector<8x128xf32>
    %c0_18 = arith.constant 0 : index
    %c0_19 = arith.constant 0 : index
    %81 = vector.load %arg8[%c0_18, %c0_19] : memref<8x128xf32, #tpu.memory_space<vmem>>, vector<8x128xf32>
    tpu.vector_store %arg8[%c0_18, %c0_19], %80 {strides = array<i32>} : memref<8x128xf32, #tpu.memory_space<vmem>>, vector<8x128xf32>,
    return
  }
  func.func @transform_0(%arg0: i32) -> (i32, i32, i32) {
    %c0_i32 = arith.constant 0 : i32
    %c0_i32_0 = arith.constant 0 : i32
    %c0_i32_1 = arith.constant 0 : i32
    return %arg0, %c0_i32, %c0_i32_0 : i32, i32, i32
  }
  func.func @transform_1(%arg0: i32) -> (i32, i32) {
    %c0_i32 = arith.constant 0 : i32
    %c0_i32_0 = arith.constant 0 : i32
    %c0_i32_1 = arith.constant 0 : i32
    return %c0_i32, %c0_i32_0 : i32, i32
  }
  func.func @transform_2(%arg0: i32) -> (i32, i32) {
    %c0_i32 = arith.constant 0 : i32
    %c0_i32_0 = arith.constant 0 : i32
    %c0_i32_1 = arith.constant 0 : i32
    return %c0_i32, %c0_i32_0 : i32, i32
  }
  func.func @transform_3(%arg0: i32) -> (i32, i32) {
    %c0_i32 = arith.constant 0 : i32
    %c0_i32_0 = arith.constant 0 : i32
    %c0_i32_1 = arith.constant 0 : i32
    return %c0_i32, %c0_i32_0 : i32, i32
  }
  func.func @transform_4(%arg0: i32) -> (i32, i32) {
    %c0_i32 = arith.constant 0 : i32
    %c0_i32_0 = arith.constant 0 : i32
    %c0_i32_1 = arith.constant 0 : i32
    return %c0_i32, %c0_i32_0 : i32, i32
  }
  func.func @transform_5(%arg0: i32) -> (i32, i32) {
    %c0_i32 = arith.constant 0 : i32
    %c0_i32_0 = arith.constant 0 : i32
    %c0_i32_1 = arith.constant 0 : i32
    return %c0_i32, %c0_i32_0 : i32, i32
  }
  func.func @transform_6(%arg0: i32) -> (i32, i32) {
    %c0_i32 = arith.constant 0 : i32
    %c0_i32_0 = arith.constant 0 : i32
    %c0_i32_1 = arith.constant 0 : i32
    return %c0_i32, %c0_i32_0 : i32, i32
  }
  func.func @transform_7(%arg0: i32) -> (i32, i32) {
    %c0_i32 = arith.constant 0 : i32
    %c0_i32_0 = arith.constant 0 : i32
    return %arg0, %c0_i32 : i32, i32
  }
}

</mosaic_0001>

<bundles_post_ra>
// kernel: rnn_classifier_forward.1
= control target key start
LH: loop header
LB: loop body
LE: loop exit
PB: predicated region body
PF: predicated region fallthrough
CT: control target
= control target key end

     0   :  { %v29_v0 = vlaneseq  ;;  %v1183_v1 = vmov 1   ;;  %v1184_v2 = vmov 0   ;;  %v1185_v9 = vmov 2   ;;  %s1193_s15 = smov 32   ;;  %s1194_s16 = smov 64   ;;  %s1571_s0 = inlined_call_operand.vmem [shape: s32[1,16,8], index: 0, kind: input, shape index: {}]   ;;  %s1572_s1 = inlined_call_operand.vmem [shape: bf16[512,32], index: 1, kind: input, shape index: {}]   ;;  %s1573_s3 = inlined_call_operand.vmem [shape: bf16[128,64], index: 3, kind: input, shape index: {}]   ;;  %s1574_s2 = inlined_call_operand.vmem [shape: f32[1,32], index: 2, kind: input, shape index: {}]   ;;  %s1575_s5 = inlined_call_operand.vmem [shape: bf16[64,128], index: 5, kind: input, shape index: {}]   ;;  %s1576_s4 = inlined_call_operand.vmem [shape: f32[1,64], index: 4, kind: input, shape index: {}]   ;;  %s1577_s6 = inlined_call_operand.vmem [shape: f32[1,128], index: 6, kind: input, shape index: {}]   ;;  %s1578_s7 = inlined_call_operand.vmem [shape: f32[8,128], index: 7, kind: output, shape index: {}]  }
   0x1   :  { %1127 = vset.pattern.permute.xlu1 %v1183_v1  ;;  %1126 = vset.pattern.permute.xlu0 %v1184_v2  ;;  %v27_v4 = vld [vmem:[%s1571_s0] sm:$0xff]  ;;  %v28_v6 = vld [vmem:[%s1571_s0 + $0x8] sm:$0xff]  ;;  %v1186_v10 = vmov 3   ;;  %v1187_v11 = vmov 4   ;;  %v1188_v12 = vmov 5   ;;  %v1189_v16 = vmov 6  }
   0x2   :  { %v1236_v3 = vand.u32 127, %v29_v0  ;;  %v1139_v13 = vld [vmem:[%s1572_s1 + $0x40] sm:$0xff]   ;;  %v1143_v18 = vld [vmem:[%s1572_s1 + $0x48] sm:$0xff]   ;;  %v1147_v22 = vld [vmem:[%s1572_s1 + $0x50] sm:$0xff]   ;;  %v1190_v23 = vmov 7   ;;  %v1191_v47 = vmov 0.0  }
   0x3   :  { %v1140_v14 = vld [vmem:[%s1572_s1 + $0xc0] sm:$0xff]   ;;  %1023 = vmatprep.subr.bf16.mxu0 %v1139_v13  ;;  %v1144_v19 = vld [vmem:[%s1572_s1 + $0xc8] sm:$0xff]   ;;  %v1148_v24 = vld [vmem:[%s1572_s1 + $0xd0] sm:$0xff]   ;;  %s1195_s17 = smov 96  }
   0x4   :  { %v31_v5 = vmul.u32 64, %v1236_v3  ;;  %v1141_v15 = vld [vmem:[%s1572_s1] sm:$0xff]   ;;  %1045 = vmatprep.subr.bf16.mxu1 %v1140_v14  ;;  %v1145_v20 = vld [vmem:[%s1572_s1 + $0x8] sm:$0xff]   ;;  %v1149_v25 = vld [vmem:[%s1572_s1 + $0x10] sm:$0xff]   ;;  %v1364_v48 = vadd.s32 128, %v1236_v3  ;;  %v1367_v49 = vadd.s32 256, %v1236_v3 }
   0x5   :  { %v1142_v17 = vld [vmem:[%s1572_s1 + $0x80] sm:$0xff]   ;;  %1024 = vmatpush3.bf16.msra.mxu0 %v1141_v15  ;;  %v1146_v21 = vld [vmem:[%s1572_s1 + $0x88] sm:$0xff]   ;;  %v1150_v26 = vld [vmem:[%s1572_s1 + $0x90] sm:$0xff]   ;;  %v1370_v50 = vadd.s32 384, %v1236_v3 }
   0x6   :  { %v1245_v7 = vadd.s32 %v31_v5, %v27_v4  ;;  %v1249_v8 = vadd.s32 %v31_v5, %v28_v6  ;;  %1046 = vmatpush3.bf16.msra.mxu1 %v1142_v17  ;;  %1025 = vmatprep.subr.bf16.mxu0 %v1143_v18  ;;  %v1151_v27 = vld [vmem:[%s1572_s1 + $0x58] sm:$0xff]   ;;  %v1155_v31 = vld [vmem:[%s1572_s1 + $0x60] sm:$0xff]   ;;  %v1159_v35 = vld [vmem:[%s1572_s1 + $0x68] sm:$0xff]  }
   0x7   :  { %1047 = vmatprep.subr.bf16.mxu1 %v1144_v19  ;;  %v1152_v28 = vld [vmem:[%s1572_s1 + $0xd8] sm:$0xff]   ;;  %v1156_v32 = vld [vmem:[%s1572_s1 + $0xe0] sm:$0xff]   ;;  %v1160_v36 = vld [vmem:[%s1572_s1 + $0xe8] sm:$0xff]  }
   0x8   :  { %76 = vperm.xlu1 %1127, %v1245_v7   ;;  %38 = vperm.xlu0 %1126, %v1245_v7   ;;  %v1153_v29 = vld [vmem:[%s1572_s1 + $0x18] sm:$0xff]   ;;  %v1157_v33 = vld [vmem:[%s1572_s1 + $0x20] sm:$0xff]   ;;  %v1161_v37 = vld [vmem:[%s1572_s1 + $0x28] sm:$0xff]  }
   0x9   :  { %1026 = vmatpush3.bf16.msra.mxu0 %v1145_v20  ;;  %v1154_v30 = vld [vmem:[%s1572_s1 + $0x98] sm:$0xff]   ;;  %v1158_v34 = vld [vmem:[%s1572_s1 + $0xa0] sm:$0xff]   ;;  %v1162_v38 = vld [vmem:[%s1572_s1 + $0xa8] sm:$0xff]  }
   0xa   :  { %1048 = vmatpush3.bf16.msra.mxu1 %v1146_v21  ;;  %1027 = vmatprep.subr.bf16.mxu0 %v1147_v22  ;;  %v1163_v39 = vld [vmem:[%s1572_s1 + $0x70] sm:$0xff]   ;;  %v1167_v43 = vld [vmem:[%s1572_s1 + $0x78] sm:$0xff]  }
   0xb   :  { %1049 = vmatprep.subr.bf16.mxu1 %v1148_v24  ;;  %v1164_v40 = vld [vmem:[%s1572_s1 + $0xf0] sm:$0xff]   ;;  %v1168_v44 = vld [vmem:[%s1572_s1 + $0xf8] sm:$0xff]  }
   0xc   :  { %79 = vperm.xlu1 %1127, %v1249_v8   ;;  %41 = vperm.xlu0 %1126, %v1249_v8   ;;  %v1165_v41 = vld [vmem:[%s1572_s1 + $0x30] sm:$0xff]   ;;  %v1169_v45 = vld [vmem:[%s1572_s1 + $0x38] sm:$0xff]  }
   0xd   :  { %1028 = vmatpush3.bf16.msra.mxu0 %v1149_v25  ;;  %v1166_v42 = vld [vmem:[%s1572_s1 + $0xb0] sm:$0xff]   ;;  %v1170_v46 = vld [vmem:[%s1572_s1 + $0xb8] sm:$0xff]  }
   0xe   :  { %1050 = vmatpush3.bf16.msra.mxu1 %v1150_v26  ;;  %1029 = vmatprep.subr.bf16.mxu0 %v1151_v27 }
   0xf   :  { %1051 = vmatprep.subr.bf16.mxu1 %v1152_v28 }
  0x10   :  { %1129 = vset.pattern.permute.xlu1 %v1185_v9  ;;  %1128 = vset.pattern.permute.xlu0 %v1185_v9 }
  0x11   :  { %117 = vperm.xlu1 %1129, %v1249_v8   ;;  %114 = vperm.xlu0 %1128, %v1245_v7  }
  0x12   :  { %1030 = vmatpush3.bf16.msra.mxu0 %v1153_v29  ;;  %1052 = vmatpush3.bf16.msra.mxu1 %v1154_v30 }
  0x13   :  { %1031 = vmatprep.subr.bf16.mxu0 %v1155_v31  ;;  %1053 = vmatprep.subr.bf16.mxu1 %v1156_v32 }
  0x15   :  { %1130 = vset.pattern.permute.xlu1 %v1186_v10  ;;  %1131 = vset.pattern.permute.xlu0 %v1186_v10 }
  0x16   :  { %152 = vperm.xlu1 %1130, %v1245_v7   ;;  %155 = vperm.xlu0 %1131, %v1249_v8  }
  0x17   :  { %1032 = vmatpush3.bf16.msra.mxu0 %v1157_v33  ;;  %1054 = vmatpush3.bf16.msra.mxu1 %v1158_v34 }
  0x18   :  { %1033 = vmatprep.subr.bf16.mxu0 %v1159_v35  ;;  %1055 = vmatprep.subr.bf16.mxu1 %v1160_v36 }
  0x1a   :  { %1132 = vset.pattern.permute.xlu1 %v1187_v11  ;;  %1133 = vset.pattern.permute.xlu0 %v1188_v12 }
  0x1b   :  { %190 = vperm.xlu1 %1132, %v1245_v7   ;;  %228 = vperm.xlu0 %1133, %v1245_v7  }
  0x1c   :  { %1034 = vmatpush3.bf16.msra.mxu0 %v1161_v37  ;;  %1056 = vmatpush3.bf16.msra.mxu1 %v1162_v38 }
  0x1d   :  { %1035 = vmatprep.subr.bf16.mxu0 %v1163_v39  ;;  %1057 = vmatprep.subr.bf16.mxu1 %v1164_v40 }
  0x1f   :  { %193 = vperm.xlu1 %1132, %v1249_v8   ;;  %1136 = vset.pattern.permute.xlu0 %v1189_v16 }
  0x20   :  { %269 = vperm.xlu0 %1136, %v1249_v8   ;;  %1036 = vmatpush3.bf16.msra.mxu0 %v1165_v41 }
  0x21   :  { %1058 = vmatpush3.bf16.msra.mxu1 %v1166_v42  ;;  %1037 = vmatprep.subr.bf16.mxu0 %v1167_v43 }
  0x22   :  { %1059 = vmatprep.subr.bf16.mxu1 %v1168_v44 }
  0x23   :  { %1134 = vset.pattern.permute.xlu1 %v1188_v12 }
  0x24   :  { %231 = vperm.xlu1 %1134, %v1249_v8   ;;  %1138 = vset.pattern.permute.xlu0 %v1190_v23 }
  0x25   :  { %1038 = vmatpush3.bf16.msra.mxu0 %v1169_v45  ;;  %1060 = vmatpush3.bf16.msra.mxu1 %v1170_v46 }
  0x26   :  { %1081 = vmatprep.subr.bf16.mxu0 %v1191_v47  ;;  %1101 = vmatprep.subr.bf16.mxu1 %v1191_v47 }
  0x28   :  { %1135 = vset.pattern.permute.xlu1 %v1189_v16 }
  0x29   :  { %266 = vperm.xlu1 %1135, %v1245_v7  }
  0x2d   :  { %1137 = vset.pattern.permute.xlu1 %v1190_v23 }
  0x2e   :  { %304 = vperm.xlu1 %1137, %v1245_v7  }
  0x32   :  { %307 = vperm.xlu1 %1137, %v1249_v8  }
  0x87   :  { %v77_v51 = vpop.permute.xlu1 %76  ;;  %v39_v52 = vpop.permute.xlu0 %38 }
  0x88   :  { %vm81_vm0 = vcmp.eq.s32.totalorder %v1236_v3, %v77_v51  ;;  %vm82_vm1 = vcmp.eq.s32.totalorder %v1364_v48, %v77_v51  ;;  %vm83_vm2 = vcmp.eq.s32.totalorder %v1367_v49, %v77_v51  ;;  %vm84_vm3 = vcmp.eq.s32.totalorder %v1370_v50, %v77_v51 }
  0x89   :  { %v919_v53 = vsel %vm81_vm0, 1.0, %v1191_v47  ;;  %v920_v54 = vsel %vm82_vm1, 1.0, %v1191_v47  ;;  %v921_v55 = vsel %vm83_vm2, 1.0, %v1191_v47  ;;  %v922_v56 = vsel %vm84_vm3, 1.0, %v1191_v47 }
  0x8a   :  { %vm43_vm4 = vcmp.eq.s32.totalorder %v1236_v3, %v39_v52  ;;  %vm44_vm5 = vcmp.eq.s32.totalorder %v1364_v48, %v39_v52  ;;  %vm45_vm6 = vcmp.eq.s32.totalorder %v1367_v49, %v39_v52  ;;  %vm46_vm7 = vcmp.eq.s32.totalorder %v1370_v50, %v39_v52 }
  0x8b   :  { %v911_v57 = vsel %vm43_vm4, 1.0, %v1191_v47  ;;  %v912_v58 = vsel %vm44_vm5, 1.0, %v1191_v47  ;;  %v913_v59 = vsel %vm45_vm6, 1.0, %v1191_v47  ;;  %v914_v60 = vsel %vm46_vm7, 1.0, %v1191_v47  ;;  %v80_v61 = vpop.permute.xlu1 %79  ;;  %v42_v2 = vpop.permute.xlu0 %41 }
  0x8c   :  { %v105_v62 = vadd.f32 %v919_v53, %v911_v57  ;;  %v106_v63 = vadd.f32 %v920_v54, %v912_v58  ;;  %v107_v0 = vadd.f32 %v921_v55, %v913_v59  ;;  %v108_v1 = vadd.f32 %v922_v56, %v914_v60 }
  0x8d   :  { %vm85_vm8 = vcmp.eq.s32.totalorder %v1236_v3, %v80_v61  ;;  %vm86_vm9 = vcmp.eq.s32.totalorder %v1364_v48, %v80_v61  ;;  %vm87_vm10 = vcmp.eq.s32.totalorder %v1367_v49, %v80_v61  ;;  %vm88_vm11 = vcmp.eq.s32.totalorder %v1370_v50, %v80_v61 }
  0x8e   :  { %v923_v4 = vsel %vm85_vm8, 1.0, %v1191_v47  ;;  %v924_v5 = vsel %vm86_vm9, 1.0, %v1191_v47  ;;  %v925_v6 = vsel %vm87_vm10, 1.0, %v1191_v47  ;;  %v926_v7 = vsel %vm88_vm11, 1.0, %v1191_v47 }
  0x8f   :  { %vm47_vm12 = vcmp.eq.s32.totalorder %v1236_v3, %v42_v2  ;;  %vm48_vm13 = vcmp.eq.s32.totalorder %v1364_v48, %v42_v2  ;;  %vm49_vm14 = vcmp.eq.s32.totalorder %v1367_v49, %v42_v2  ;;  %vm50_vm15 = vcmp.eq.s32.totalorder %v1370_v50, %v42_v2 }
  0x90   :  { %v915_v8 = vsel %vm47_vm12, 1.0, %v1191_v47  ;;  %v916_v9 = vsel %vm48_vm13, 1.0, %v1191_v47  ;;  %v917_v10 = vsel %vm49_vm14, 1.0, %v1191_v47  ;;  %v918_v11 = vsel %vm50_vm15, 1.0, %v1191_v47  ;;  %v118_v12 = vpop.permute.xlu1 %117  ;;  %v115_v17 = vpop.permute.xlu0 %114 }
  0x91   :  { %v109_v13 = vadd.f32 %v923_v4, %v915_v8  ;;  %v110_v14 = vadd.f32 %v924_v5, %v916_v9  ;;  %v111_v15 = vadd.f32 %v925_v6, %v917_v10  ;;  %v112_v16 = vadd.f32 %v926_v7, %v918_v11 }
  0x92   :  { %vm123_vm0 = vcmp.eq.s32.totalorder %v1236_v3, %v118_v12  ;;  %vm124_vm1 = vcmp.eq.s32.totalorder %v1364_v48, %v118_v12  ;;  %vm125_vm2 = vcmp.eq.s32.totalorder %v1367_v49, %v118_v12  ;;  %vm126_vm3 = vcmp.eq.s32.totalorder %v1370_v50, %v118_v12 }
  0x93   :  { %v931_v18 = vsel %vm123_vm0, 1.0, %v1191_v47  ;;  %v932_v19 = vsel %vm124_vm1, 1.0, %v1191_v47  ;;  %v933_v20 = vsel %vm125_vm2, 1.0, %v1191_v47  ;;  %v934_v21 = vsel %vm126_vm3, 1.0, %v1191_v47 }
  0x94   :  { %v147_v22 = vadd.f32 %v931_v18, %v109_v13  ;;  %v148_v23 = vadd.f32 %v932_v19, %v110_v14  ;;  %v149_v24 = vadd.f32 %v933_v20, %v111_v15  ;;  %v150_v25 = vadd.f32 %v934_v21, %v112_v16 }
  0x95   :  { %vm119_vm4 = vcmp.eq.s32.totalorder %v1236_v3, %v115_v17  ;;  %vm120_vm5 = vcmp.eq.s32.totalorder %v1364_v48, %v115_v17  ;;  %vm121_vm6 = vcmp.eq.s32.totalorder %v1367_v49, %v115_v17  ;;  %vm122_vm7 = vcmp.eq.s32.totalorder %v1370_v50, %v115_v17  ;;  %v153_v26 = vpop.permute.xlu1 %152  ;;  %v156_v35 = vpop.permute.xlu0 %155 }
  0x96   :  { %v927_v27 = vsel %vm119_vm4, 1.0, %v1191_v47  ;;  %v928_v28 = vsel %vm120_vm5, 1.0, %v1191_v47  ;;  %v929_v29 = vsel %vm121_vm6, 1.0, %v1191_v47  ;;  %v930_v30 = vsel %vm122_vm7, 1.0, %v1191_v47 }
  0x97   :  { %v143_v31 = vadd.f32 %v927_v27, %v105_v62  ;;  %v144_v32 = vadd.f32 %v928_v28, %v106_v63  ;;  %v145_v33 = vadd.f32 %v929_v29, %v107_v0  ;;  %v146_v34 = vadd.f32 %v930_v30, %v108_v1 }
  0x98   :  { %vm157_vm8 = vcmp.eq.s32.totalorder %v1236_v3, %v153_v26  ;;  %vm158_vm9 = vcmp.eq.s32.totalorder %v1364_v48, %v153_v26  ;;  %vm159_vm10 = vcmp.eq.s32.totalorder %v1367_v49, %v153_v26  ;;  %vm160_vm11 = vcmp.eq.s32.totalorder %v1370_v50, %v153_v26 }
  0x99   :  { %v935_v36 = vsel %vm157_vm8, 1.0, %v1191_v47  ;;  %v936_v37 = vsel %vm158_vm9, 1.0, %v1191_v47  ;;  %v937_v38 = vsel %vm159_vm10, 1.0, %v1191_v47  ;;  %v938_v39 = vsel %vm160_vm11, 1.0, %v1191_v47 }
  0x9a   :  { %v181_v40 = vadd.f32 %v935_v36, %v143_v31  ;;  %v182_v41 = vadd.f32 %v936_v37, %v144_v32  ;;  %v183_v42 = vadd.f32 %v937_v38, %v145_v33  ;;  %v184_v43 = vadd.f32 %v938_v39, %v146_v34  ;;  %v191_v44 = vpop.permute.xlu1 %190  ;;  %v229_v57 = vpop.permute.xlu0 %228 }
  0x9b   :  { %vm161_vm12 = vcmp.eq.s32.totalorder %v1236_v3, %v156_v35  ;;  %vm162_vm13 = vcmp.eq.s32.totalorder %v1364_v48, %v156_v35  ;;  %vm163_vm14 = vcmp.eq.s32.totalorder %v1367_v49, %v156_v35  ;;  %vm164_vm15 = vcmp.eq.s32.totalorder %v1370_v50, %v156_v35 }
  0x9c   :  { %v939_v45 = vsel %vm161_vm12, 1.0, %v1191_v47  ;;  %v940_v46 = vsel %vm162_vm13, 1.0, %v1191_v47  ;;  %v941_v51 = vsel %vm163_vm14, 1.0, %v1191_v47  ;;  %v942_v52 = vsel %vm164_vm15, 1.0, %v1191_v47 }
  0x9d   :  { %v185_v53 = vadd.f32 %v939_v45, %v147_v22  ;;  %v186_v54 = vadd.f32 %v940_v46, %v148_v23  ;;  %v187_v55 = vadd.f32 %v941_v51, %v149_v24  ;;  %v188_v56 = vadd.f32 %v942_v52, %v150_v25 }
  0x9e   :  { %vm195_vm0 = vcmp.eq.s32.totalorder %v1236_v3, %v191_v44  ;;  %vm196_vm1 = vcmp.eq.s32.totalorder %v1364_v48, %v191_v44  ;;  %vm197_vm2 = vcmp.eq.s32.totalorder %v1367_v49, %v191_v44  ;;  %vm198_vm3 = vcmp.eq.s32.totalorder %v1370_v50, %v191_v44  ;;  %v194_v58 = vpop.permute.xlu1 %193 }
  0x9f   :  { %v943_v59 = vsel %vm195_vm0, 1.0, %v1191_v47  ;;  %v944_v60 = vsel %vm196_vm1, 1.0, %v1191_v47  ;;  %v945_v61 = vsel %vm197_vm2, 1.0, %v1191_v47  ;;  %v946_v62 = vsel %vm198_vm3, 1.0, %v1191_v47  ;;  %v270_v17 = vpop.permute.xlu0 %269 }
  0xa0   :  { %v219_v63 = vadd.f32 %v943_v59, %v181_v40  ;;  %v220_v0 = vadd.f32 %v944_v60, %v182_v41  ;;  %v221_v1 = vadd.f32 %v945_v61, %v183_v42  ;;  %v1444_v2 = vadd.f32 %v946_v62, %v184_v43 }
  0xa1   :  { %vm233_vm4 = vcmp.eq.s32.totalorder %v1236_v3, %v229_v57  ;;  %vm234_vm5 = vcmp.eq.s32.totalorder %v1364_v48, %v229_v57  ;;  %vm235_vm6 = vcmp.eq.s32.totalorder %v1367_v49, %v229_v57  ;;  %vm236_vm7 = vcmp.eq.s32.totalorder %v1370_v50, %v229_v57 }
  0xa2   :  { %v951_v4 = vsel %vm233_vm4, 1.0, %v1191_v47  ;;  %v952_v5 = vsel %vm234_vm5, 1.0, %v1191_v47  ;;  %v953_v6 = vsel %vm235_vm6, 1.0, %v1191_v47  ;;  %v954_v7 = vsel %vm236_vm7, 1.0, %v1191_v47 }
  0xa3   :  { %v257_v8 = vadd.f32 %v951_v4, %v219_v63  ;;  %v259_v9 = vadd.f32 %v953_v6, %v221_v1  ;;  %vm199_vm8 = vcmp.eq.s32.totalorder %v1236_v3, %v194_v58  ;;  %vm200_vm9 = vcmp.eq.s32.totalorder %v1364_v48, %v194_v58  ;;  %v232_v10 = vpop.permute.xlu1 %231 }
  0xa4   :  { %vm201_vm10 = vcmp.eq.s32.totalorder %v1367_v49, %v194_v58  ;;  %vm202_vm11 = vcmp.eq.s32.totalorder %v1370_v50, %v194_v58  ;;  %v947_v11 = vsel %vm199_vm8, 1.0, %v1191_v47  ;;  %v948_v12 = vsel %vm200_vm9, 1.0, %v1191_v47 }
  0xa5   :  { %v949_v13 = vsel %vm201_vm10, 1.0, %v1191_v47  ;;  %v950_v14 = vsel %vm202_vm11, 1.0, %v1191_v47  ;;  %v223_v15 = vadd.f32 %v947_v11, %v185_v53  ;;  %v224_v16 = vadd.f32 %v948_v12, %v186_v54  ;;  %v1176_v11 = vld [vmem:[%s1573_s3 + $0x28] sm:$0xff]   ;;  %v1177_v12 = vld [vmem:[%s1573_s3 + $0x30] sm:$0xff]  }
  0xa6   :  { %v225_v18 = vadd.f32 %v949_v13, %v187_v55  ;;  %v226_v19 = vadd.f32 %v950_v14, %v188_v56  ;;  %vm237_vm12 = vcmp.eq.s32.totalorder %v1236_v3, %v232_v10  ;;  %vm238_vm13 = vcmp.eq.s32.totalorder %v1364_v48, %v232_v10 }
  0xa7   :  { %vm239_vm14 = vcmp.eq.s32.totalorder %v1367_v49, %v232_v10  ;;  %vm240_vm15 = vcmp.eq.s32.totalorder %v1370_v50, %v232_v10  ;;  %v955_v20 = vsel %vm237_vm12, 1.0, %v1191_v47  ;;  %v956_v21 = vsel %vm238_vm13, 1.0, %v1191_v47  ;;  %v1175_v10 = vld [vmem:[%s1573_s3 + $0x20] sm:$0xff]  }
  0xa8   :  { %v957_v22 = vsel %vm239_vm14, 1.0, %v1191_v47  ;;  %v958_v23 = vsel %vm240_vm15, 1.0, %v1191_v47  ;;  %v261_v24 = vadd.f32 %v955_v20, %v223_v15  ;;  %vm275_vm0 = vcmp.eq.s32.totalorder %v1236_v3, %v270_v17  ;;  %v267_v25 = vpop.permute.xlu1 %266  ;;  %v975_v15 = vld [vmem:[%s1574_s2] ss:$0 sm:$0xff]  ;;  %v1178_v20 = vld [vmem:[%s1573_s3 + $0x38] sm:$0xff]  }
  0xa9   :  { %v263_v26 = vadd.f32 %v957_v22, %v225_v18  ;;  %vm276_vm1 = vcmp.eq.s32.totalorder %v1364_v48, %v270_v17  ;;  %vm277_vm2 = vcmp.eq.s32.totalorder %v1367_v49, %v270_v17  ;;  %vm278_vm3 = vcmp.eq.s32.totalorder %v1370_v50, %v270_v17 }
  0xaa   :  { %v963_v27 = vsel %vm275_vm0, 1.0, %v1191_v47  ;;  %v965_v28 = vsel %vm277_vm2, 1.0, %v1191_v47  ;;  %vm271_vm4 = vcmp.eq.s32.totalorder %v1236_v3, %v267_v25  ;;  %vm272_vm5 = vcmp.eq.s32.totalorder %v1364_v48, %v267_v25 }
  0xab   :  { %v299_v29 = vadd.f32 %v963_v27, %v261_v24  ;;  %v301_v30 = vadd.f32 %v965_v28, %v263_v26  ;;  %vm273_vm6 = vcmp.eq.s32.totalorder %v1367_v49, %v267_v25  ;;  %vm274_vm7 = vcmp.eq.s32.totalorder %v1370_v50, %v267_v25  ;;  %v1179_v28 = vld [vmem:[%s1575_s5] sm:$0xff]  }
  0xac   :  { %v959_v31 = vsel %vm271_vm4, 1.0, %v1191_v47  ;;  %v961_v32 = vsel %vm273_vm6, 1.0, %v1191_v47  ;;  %v258_v33 = vadd.f32 %v952_v5, %v220_v0  ;;  %v262_v34 = vadd.f32 %v956_v21, %v224_v16 }
  0xad   :  { %v295_v35 = vadd.f32 %v959_v31, %v257_v8  ;;  %v297_v36 = vadd.f32 %v961_v32, %v259_v9  ;;  %v305_v37 = vpop.permute.xlu1 %304  ;;  %v960_v38 = vsel %vm272_vm5, 1.0, %v1191_v47  ;;  %v964_v39 = vsel %vm276_vm1, 1.0, %v1191_v47  ;;  %v1173_v8 = vld [vmem:[%s1573_s3 + $0x10] sm:$0xff]   ;;  %v1174_v9 = vld [vmem:[%s1573_s3 + $0x18] sm:$0xff]   ;;  %v1180_v31 = vld [vmem:[%s1575_s5 + $0x8] sm:$0xff]  }
  0xae   :  { %vm309_vm8 = vcmp.eq.s32.totalorder %v1236_v3, %v305_v37  ;;  %vm311_vm9 = vcmp.eq.s32.totalorder %v1367_v49, %v305_v37  ;;  %v296_v40 = vadd.f32 %v960_v38, %v258_v33  ;;  %v300_v41 = vadd.f32 %v964_v39, %v262_v34 }
  0xaf   :  { %v967_v42 = vsel %vm309_vm8, 1.0, %v1191_v47  ;;  %v969_v43 = vsel %vm311_vm9, 1.0, %v1191_v47  ;;  %vm310_vm10 = vcmp.eq.s32.totalorder %v1364_v48, %v305_v37  ;;  %v260_v44 = vadd.f32 %v954_v7, %v1444_v2  ;;  %v1172_v7 = vld [vmem:[%s1573_s3 + $0x8] sm:$0xff]  }
  0xb0   :  { %v968_v45 = vsel %vm310_vm10, 1.0, %v1191_v47  ;;  %v264_v46 = vadd.f32 %v958_v23, %v226_v19  ;;  %v962_v51 = vsel %vm274_vm7, 1.0, %v1191_v47  ;;  %v966_v52 = vsel %vm278_vm3, 1.0, %v1191_v47 }
  0xb1   :  { %v308_v53 = vpop.permute.xlu1 %307  ;;  %v334_v54 = vadd.f32 %v968_v45, %v296_v40  ;;  %v298_v55 = vadd.f32 %v962_v51, %v260_v44  ;;  %vm312_vm11 = vcmp.eq.s32.totalorder %v1370_v50, %v305_v37  ;;  %v333_v56 = vadd.f32 %v967_v42, %v295_v35  ;;  %v1181_v42 = vld [vmem:[%s1575_s5 + $0x10] sm:$0xff]   ;;  %v1008_v44 = vld [vmem:[%s1576_s4] ss:$0 sm:$0xff] }
  0xb2   :  { %vm313_vm12 = vcmp.eq.s32.totalorder %v1236_v3, %v308_v53  ;;  %vm315_vm13 = vcmp.eq.s32.totalorder %v1367_v49, %v308_v53  ;;  %vm314_vm14 = vcmp.eq.s32.totalorder %v1364_v48, %v308_v53  ;;  %v302_v57 = vadd.f32 %v966_v52, %v264_v46 }
  0xb3   :  { %v971_v58 = vsel %vm313_vm12, 1.0, %v1191_v47  ;;  %v973_v59 = vsel %vm315_vm13, 1.0, %v1191_v47  ;;  %v972_v60 = vsel %vm314_vm14, 1.0, %v1191_v47  ;;  %vm316_vm15 = vcmp.eq.s32.totalorder %v1370_v50, %v308_v53  ;;  %v1171_v50 = vld [vmem:[%s1573_s3] sm:$0xff]  }
  0xb4   :  { %v338_v61 = vadd.f32 %v972_v60, %v300_v41  ;;  %v970_v62 = vsel %vm312_vm11, 1.0, %v1191_v47  ;;  %v974_v63 = vsel %vm316_vm15, 1.0, %v1191_v47  ;;  %v337_v0 = vadd.f32 %v971_v58, %v299_v29 }
  0xb5   :  { %v336_v3 = vadd.f32 %v970_v62, %v298_v55  ;;  %v340_v1 = vadd.f32 %v974_v63, %v302_v57  ;;  %v335_v49 = vadd.f32 %v969_v43, %v297_v36  ;;  %v339_v2 = vadd.f32 %v973_v59, %v301_v30  ;;  %v1182_v43 = vld [vmem:[%s1575_s5 + $0x18] sm:$0xff]  }
  0xb6   :  { %v342_v48 = vpack.c.bf16 %v338_v61, %v334_v54  ;;  %v341_v4 = vpack.c.bf16 %v337_v0, %v333_v56  ;;  %vm1192_vm0 = vmmov 0   ;;  %vm704_vm1 = vcmask 261120   ;;  %v1017_v56 = vld [vmem:[%s1577_s6] ss:$0 sm:$0xff] }
  0xb7   :  { %v344_v5 = vpack.c.bf16 %v340_v1, %v336_v3  ;;  %v343_v6 = vpack.c.bf16 %v339_v2, %v335_v49  ;;  %vm706_vm2 = vcmask 523264   ;;  %vm708_vm3 = vcmask 785408  }
  0xb8   :  { %640 = vmatprep.mubr.bf16.mxu0 %v342_v48 }
  0xb9   :  { %681 = vmatprep.mubr.bf16.mxu1 %v344_v5  ;;  %641 = vmatmul.mubr.bf16.vlgmr.msra.gmra.mrb[0].mxu0 %v341_v4 }
  0xba   :  { %682 = vmatmul.mubr.bf16.vlgmr.msra.gmra.mrb[0].mxu1 %v343_v6  ;;  %1082 = vmatpush3.bf16.msra.mxu0 %v1171_v50 }
  0xbb   :  { %1083 = vmatprep.subr.bf16.mxu0 %v1191_v47  ;;  %1097 = vmatprep.mubr.msk.bf16.mxu0 %vm1192_vm0, %v1191_v47 }
  0xbc   :  { %1109 = vmatprep.mubr.msk.bf16.mxu1 %vm1192_vm0, %v1191_v47  ;;  %1102 = vmatpush3.bf16.msra.mxu1 %v1179_v28 }
  0xbd   :  { %1103 = vmatprep.subr.bf16.mxu1 %v1191_v47 }
  0xbe   :  { %1084 = vmatpush3.bf16.msra.mxu0 %v1172_v7 }
  0xbf   :  { %1085 = vmatprep.subr.bf16.mxu0 %v1191_v47 }
  0xc0   :  { %1104 = vmatpush3.bf16.msra.mxu1 %v1180_v31 }
  0xc1   :  { %1105 = vmatprep.subr.bf16.mxu1 %v1191_v47 }
  0xc2   :  { %1086 = vmatpush3.bf16.msra.mxu0 %v1173_v8 }
  0xc3   :  { %1087 = vmatprep.subr.bf16.mxu0 %v1191_v47 }
  0xc4   :  { %1106 = vmatpush3.bf16.msra.mxu1 %v1181_v42 }
  0xc5   :  { %1107 = vmatprep.subr.bf16.mxu1 %v1191_v47 }
  0xc6   :  { %1088 = vmatpush3.bf16.msra.mxu0 %v1174_v9 }
  0xc7   :  { %1089 = vmatprep.subr.bf16.mxu0 %v1191_v47 }
  0xc8   :  { %1108 = vmatpush3.bf16.msra.mxu1 %v1182_v43 }
  0xca   :  { %1090 = vmatpush3.bf16.msra.mxu0 %v1175_v10 }
  0xcb   :  { %1091 = vmatprep.subr.bf16.mxu0 %v1191_v47 }
  0xce   :  { %1092 = vmatpush3.bf16.msra.mxu0 %v1176_v11 }
  0xcf   :  { %1093 = vmatprep.subr.bf16.mxu0 %v1191_v47 }
  0xd2   :  { %1094 = vmatpush3.bf16.msra.mxu0 %v1177_v12 }
  0xd3   :  { %1095 = vmatprep.subr.bf16.mxu0 %v1191_v47 }
  0xd6   :  { %1096 = vmatpush3.bf16.msra.mxu0 %v1178_v20 }
 0x18c   :  { %v1039_v13 = vpop.f32.mrb[0].mxu0 }
 0x18d   :  { %v1061_v14 = vpop.f32.mrb[0].mxu1  ;;  %v1040_v16 = vpop.f32.mrb[1].mxu0 }
 0x18e   :  { %v1041_v17 = vadd.f32 %v1040_v16, %v1039_v13  ;;  %v1062_v18 = vpop.f32.mrb[1].mxu1  ;;  %v1042_v19 = vpop.f32.mrb[2].mxu0 }
 0x18f   :  { %v1063_v21 = vadd.f32 %v1062_v18, %v1061_v14  ;;  %v1064_v22 = vpop.f32.mrb[2].mxu1  ;;  %v1043_v23 = vpop.f32.mrb[3].mxu0 }
 0x190   :  { %v643_v24 = vadd.f32 %v1041_v17, %v975_v15  ;;  %v1044_v25 = vadd.f32 %v1043_v23, %v1042_v19  ;;  %v1065_v26 = vpop.f32.mrb[3].mxu1 }
 0x191   :  { %v1066_v27 = vadd.f32 %v1065_v26, %v1064_v22 }
 0x192   :  { %v684_v29 = vadd.f32 %v1063_v21, %v643_v24  ;;  %v646_v30 = vadd.f32 %v1044_v25, %v975_v15 }
 0x194   :  { %v687_v32 = vadd.f32 %v1066_v27, %v646_v30 }
 0x196   :  { %693 = vrot.lane.b32.xlu0 %v687_v32, %s1193_s15  ;;  %v690_v33 = vsub.f32 %v684_v29, %v687_v32  ;;  %v691_v34 = vmul.f32 %v687_v32, %v684_v29 }
 0x198   :  { %697 = vrot.lane.b32.xlu1 %v690_v33, %s1194_s16 }
 0x19a   :  { %701 = vrot.lane.b32.xlu0 %v691_v34, %s1195_s17 }
 0x208   :  { %v694_v35 = vpop.permute.xlu0 %693 }
 0x209   :  { %v705_v36 = vsel %vm704_vm1, %v684_v29, %v694_v35 }
 0x20a   :  { %v698_v37 = vpop.permute.xlu1 %697 }
 0x20b   :  { %v707_v38 = vsel %vm706_vm2, %v705_v36, %v698_v37 }
 0x20c   :  { %v702_v39 = vpop.permute.xlu0 %701 }
 0x20d   :  { %v709_v40 = vsel %vm708_vm3, %v707_v38, %v702_v39 }
 0x20e   :  { %v710_v41 = vpack.c.bf16 %v709_v40, %v709_v40 }
 0x210   :  { %1098 = vmatmul.mubr.bf16.vlgmr.msra.gmra.mrb[4].mxu0 %v710_v41 }
 0x2e3   :  { %v816_v45 = vpop.f32.mrb[4].mxu0 }
 0x2e4   :  { %v817_v46 = vadd.f32 %v1008_v44, %v816_v45  ;;  %v1099_v51 = vpop.f32.mrb[5].mxu0 }
 0x2e5   :  { %v819_v52 = vpop.f32.mrb[6].mxu0 }
 0x2e6   :  { %v822_v53 = vmax.f32 %v817_v46, 0.0  ;;  %v1100_v54 = vpop.f32.mrb[7].mxu0 }
 0x2e8   :  { %v823_v55 = vpack.c.bf16 %v822_v53, %v822_v53 }
 0x2ea   :  { %1110 = vmatmul.mubr.msk.bf16.vlgmr.msra.gmra.mrb[4].mxu1 %vm706_vm2, %v823_v55 }
 0x3bd   :  { %v900_v57 = vpop.f32.mrb[4].mxu1 }
 0x3be   :  { %v901_v47 = vadd.f32 %v1017_v56, %v900_v57  ;;  %v1111_v58 = vpop.f32.mrb[5].mxu1 }
 0x3bf   :  { %v903_v59 = vpop.f32.mrb[6].mxu1 }
 0x3c0   :  { %906 = vst [vmem:[%s1578_s7] sm:$0xff] %v901_v47  ;;  %v1112_v60 = vpop.f32.mrb[7].mxu1 }

</bundles_post_ra>
